<compile_context>
chip_gen: v7x
topology: tpu7x:2x2x1
jax: 0.10.0
libtpu: 0.0.40
codegen_flags: <defaults>
</compile_context>

<pallas_src>
import functools
from dataclasses import dataclass
from typing import List

import jax
import jax.numpy as jnp
from jax import lax
from jax.experimental import pallas as pl
from jax.experimental.pallas import tpu as pltpu


# ------------------------------------------------------------------ helpers

def _round_up(x: int, m: int) -> int:
    return ((x + m - 1) // m) * m


def _row_tile(dtype) -> int:
    # sublane tile: 8 rows for 4-byte dtypes, 16 for bf16, 32 for int8
    itemsize = jnp.dtype(dtype).itemsize
    return max(8, 32 // itemsize)


def _vmem_limit(need_bytes: int) -> int:
    # generous headroom, but stay well under v7x's 64 MiB physical VMEM
    return int(min(48 * 2**20, max(4 * 2**20, 2 * need_bytes + (1 << 20))))


# ------------------------------------------------------------------ kernels

def _add_global_kernel(nb_ref, node_ref, glob_ref, out_ref):
    # out[r, :] = node[r, :] + global[node_batch[r], :]
    # nb_ref   : (rows, 1) int32 block of node_batch
    # node_ref : (rows, D) block of node_feat
    # glob_ref : (B_pad, D) fully VMEM-resident (padded) global_feat
    nb = nb_ref[...]                                             # (rows, 1)
    rows = nb.shape[0]
    b_pad = glob_ref.shape[0]
    iota = lax.broadcasted_iota(jnp.int32, (rows, b_pad), 1)
    one_hot = (nb == iota).astype(glob_ref.dtype)                # (rows, B_pad)
    g2n = jnp.dot(one_hot, glob_ref[...],
                  preferred_element_type=jnp.float32)            # MXU select
    out_ref[...] = node_ref[...] + g2n.astype(out_ref.dtype)


def _gather_rows_kernel(idx_ref, table_ref, out_ref, *, rows):
    # out[r, :] = table[idx[block_base + r], :]
    # idx_ref   : SMEM scalar-prefetched row indices (padded)
    # table_ref : (Ntab, D) fully VMEM-resident gather table
    base = pl.program_id(0) * rows

    def body(r, carry):
        src = idx_ref[base + r]
        out_ref[pl.ds(r, 1), :] = table_ref[pl.ds(src, 1), :]
        return carry

    lax.fori_loop(0, rows, body, None,
                  unroll=True if rows <= 32 else 8)


# ------------------------------------------------------------------ wrappers

def fused_add_global(node_feat, global_feat, node_batch, *, max_rows=256):
    """tng0[i] = node_feat[i] + global_feat[node_batch[i]]  (level-0 output)."""
    n, d = node_feat.shape
    b = global_feat.shape[0]
    out_dtype = jnp.result_type(node_feat.dtype, global_feat.dtype)
    node_feat = node_feat.astype(out_dtype)
    global_feat = global_feat.astype(out_dtype)
    node_batch = node_batch.astype(jnp.int32)

    tile = _row_tile(out_dtype)
    rows = min(_round_up(max_rows, tile), _round_up(n, tile))
    n_pad = _round_up(n, rows)
    b_pad = _round_up(max(b, 1), 8)

    if n_pad != n:
        node_feat = jnp.pad(node_feat, ((0, n_pad - n), (0, 0)))
        node_batch = jnp.pad(node_batch, (0, n_pad - n))   # pad idx 0 is valid
    if b_pad != b:
        global_feat = jnp.pad(global_feat, ((0, b_pad - b), (0, 0)))
    node_batch_2d = node_batch.reshape(n_pad, 1)
    grid = n_pad // rows

    isz = jnp.dtype(out_dtype).itemsize
    need = isz * (4 * rows * d + 2 * b_pad * d) + 4 * 2 * rows

    out = pl.pallas_call(
        _add_global_kernel,
        out_shape=jax.ShapeDtypeStruct((n_pad, d), out_dtype),
        grid=(grid,),
        in_specs=[
            pl.BlockSpec((rows, 1), lambda i: (i, 0)),       # node_batch rows
            pl.BlockSpec((rows, d), lambda i: (i, 0)),       # node rows
            pl.BlockSpec((b_pad, d), lambda i: (0, 0)),      # resident global
        ],
        out_specs=pl.BlockSpec((rows, d), lambda i: (i, 0)),
        compiler_params=pltpu.CompilerParams(
            dimension_semantics=("parallel",),
            vmem_limit_bytes=_vmem_limit(need),
        ),
    )(node_batch_2d, node_feat, global_feat)
    return out[:n] if n_pad != n else out


def fused_gather_rows(table, idx, *, max_rows=256):
    """out[i] = table[idx[i]]  (one call for all tree levels, table VMEM-resident)."""
    k = int(idx.shape[0])
    n, d = table.shape
    if k == 0:
        return jnp.zeros((0, d), table.dtype)
    idx = idx.astype(jnp.int32)

    tile = _row_tile(table.dtype)
    rows = min(_round_up(max_rows, tile), _round_up(k, tile))
    k_pad = _round_up(k, rows)
    if k_pad != k:
        idx = jnp.pad(idx, (0, k_pad - k))                  # pad idx 0 is valid
    grid = k_pad // rows

    isz = jnp.dtype(table.dtype).itemsize
    need = isz * (2 * n * d + 2 * rows * d)

    out = pl.pallas_call(
        functools.partial(_gather_rows_kernel, rows=rows),
        out_shape=jax.ShapeDtypeStruct((k_pad, d), table.dtype),
        grid_spec=pltpu.PrefetchScalarGridSpec(
            num_scalar_prefetch=1,                           # idx -> SMEM
            grid=(grid,),
            in_specs=[
                pl.BlockSpec((n, d), lambda i, ix: (0, 0)),  # resident table
            ],
            out_specs=pl.BlockSpec((rows, d), lambda i, ix: (i, 0)),
        ),
        compiler_params=pltpu.CompilerParams(
            dimension_semantics=("parallel",),
            vmem_limit_bytes=_vmem_limit(need),
        ),
    )(idx, table)
    return out[:k] if k_pad != k else out


# ------------------------------------------------------------------ module

@dataclass
class PathTreeBatch:
    tree_node_image_list: List[jnp.ndarray]   # index arrays into nodes per level
    tree_edge_image_list: List[jnp.ndarray]   # index arrays into edges per level
    node_batch: jnp.ndarray                   # [N] graph id per node


class TreeAssign:
    """JAX/Pallas port of GlobalTopGNN Tree_Assign (no learnable params)."""

    def __init__(self, height: int):
        self.height = height

    def __call__(self, ptb: PathTreeBatch, node_feat, edge_feat, global_feat):
        height_p = self.height + 1

        # level 0: tng0 = node_feat + global_feat[node_batch]; te0 = edge_feat
        tng0 = fused_add_global(node_feat, global_feat, ptb.node_batch)
        tng_feat_list = [tng0]
        te_feat_list = [edge_feat]

        if height_p > 1:
            n_idx = [jnp.asarray(ptb.tree_node_image_list[k], jnp.int32)
                     for k in range(1, height_p)]
            e_idx = [jnp.asarray(ptb.tree_edge_image_list[k], jnp.int32)
                     for k in range(1, height_p)]
            n_lens = [int(a.shape[0]) for a in n_idx]
            e_lens = [int(a.shape[0]) for a in e_idx]

            # one fused gather per table (levels 1..height), split afterwards
            tng_cat = fused_gather_rows(tng0, jnp.concatenate(n_idx))
            te_cat = fused_gather_rows(edge_feat, jnp.concatenate(e_idx))

            off = 0
            for ln in n_lens:
                tng_feat_list.append(tng_cat[off:off + ln])
                off += ln
            off = 0
            for ln in e_lens:
                te_feat_list.append(te_cat[off:off + ln])
                off += ln

        return tng_feat_list, te_feat_list


# ------------------------------------------------------------------ reference

def tree_assign_reference(ptb, node_feat, edge_feat, global_feat, height):
    height_p = height + 1
    n_list = ptb.tree_node_image_list
    e_list = ptb.tree_edge_image_list
    tn = [node_feat] + [node_feat[n_list[k]] for k in range(1, height_p)]
    te = [edge_feat] + [edge_feat[e_list[k]] for k in range(1, height_p)]
    g2n = global_feat[ptb.node_batch]
    g2n_l = [g2n] + [g2n[n_list[k]] for k in range(1, height_p)]
    tng = [a + b for a, b in zip(tn, g2n_l)]
    return tng, te


# ------------------------------------------------------------------ main

if __name__ == "__main__":
    key = jax.random.PRNGKey(0)
    kn, ke, kg, kb, k1, k2 = jax.random.split(key, 6)

    B, N, E = 2, 16, 24        # graphs, nodes, edges
    D, De = 128, 128           # node/global feature dim, edge feature dim
    height = 2
    height_p = height + 1

    node_feat = jax.random.normal(kn, (N, D), dtype=jnp.float32)
    edge_feat = jax.random.normal(ke, (E, De), dtype=jnp.float32)
    global_feat = jax.random.normal(kg, (B, D), dtype=jnp.float32)
    node_batch = jax.random.randint(kb, (N,), 0, B, dtype=jnp.int32)

    # synthetic tree image lists (level 0 entries are unused by the module)
    n_lens = [N, 12, 20]
    e_lens = [E, 10, 14]
    n_keys = jax.random.split(k1, height_p)
    e_keys = jax.random.split(k2, height_p)
    tree_node_image_list = [jnp.arange(N, dtype=jnp.int32)] + [
        jax.random.randint(n_keys[k], (n_lens[k],), 0, N, dtype=jnp.int32)
        for k in range(1, height_p)
    ]
    tree_edge_image_list = [jnp.arange(E, dtype=jnp.int32)] + [
        jax.random.randint(e_keys[k], (e_lens[k],), 0, E, dtype=jnp.int32)
        for k in range(1, height_p)
    ]

    ptb = PathTreeBatch(tree_node_image_list, tree_edge_image_list, node_batch)

    model = TreeAssign(height)
    tng_list, te_list = model(ptb, node_feat, edge_feat, global_feat)
    tng_list = [jax.block_until_ready(x) for x in tng_list]
    te_list = [jax.block_until_ready(x) for x in te_list]

    tng_ref, te_ref = tree_assign_reference(ptb, node_feat, edge_feat,
                                            global_feat, height)

    for a, b in zip(tng_list, tng_ref):
        assert a.shape == b.shape and a.dtype == b.dtype
        assert jnp.allclose(a, b, atol=1e-6, rtol=1e-6)
    for a, b in zip(te_list, te_ref):
        assert a.shape == b.shape and a.dtype == b.dtype
        assert jnp.allclose(a, b, atol=1e-6, rtol=1e-6)

    print("KERNEL_OK")
</pallas_src>

<mosaic_0001>
module attributes {stable_mosaic.version = 11 : i64} {
  func.func @_add_global_kernel(%arg0: i32, %arg1: memref<16x1xi32, #tpu.memory_space<vmem>>, %arg2: memref<16x128xf32, #tpu.memory_space<vmem>>, %arg3: memref<8x128xf32, #tpu.memory_space<vmem>>, %arg4: memref<16x128xf32, #tpu.memory_space<vmem>>) attributes {dimension_semantics = [#tpu.dimension_semantics<parallel>], iteration_bounds = array<i64: 1>, scalar_prefetch = 0 : i64, scratch_operands = 0 : i64, tpu.core_type = #tpu.core_type<tc>, window_params = [{transform_indices = @transform_0, window_bounds = array<i64: 16, 1>}, {transform_indices = @transform_1, window_bounds = array<i64: 16, 128>}, {pipeline_mode = #tpu.pipeline_mode<synchronous>, transform_indices = @transform_2, window_bounds = array<i64: 8, 128>}, {transform_indices = @transform_3, window_bounds = array<i64: 16, 128>}]} {
    %c0 = arith.constant 0 : index
    %c0_0 = arith.constant 0 : index
    %0 = vector.load %arg1[%c0, %c0_0] : memref<16x1xi32, #tpu.memory_space<vmem>>, vector<16x1xi32>
    %1 = tpu.iota {dimensions = array<i32: 1>} : vector<16x8xi32>
    %2 = vector.broadcast %0 : vector<16x1xi32> to vector<16x8xi32>
    %3 = arith.cmpi eq, %2, %1 : vector<16x8xi32>
    %4 = arith.extui %3 : vector<16x8xi1> to vector<16x8xi32>
    %5 = arith.sitofp %4 : vector<16x8xi32> to vector<16x8xf32>
    %c0_1 = arith.constant 0 : index
    %c0_2 = arith.constant 0 : index
    %6 = vector.load %arg3[%c0_1, %c0_2] : memref<8x128xf32, #tpu.memory_space<vmem>>, vector<8x128xf32>
    %cst = arith.constant dense<0.000000e+00> : vector<16x128xf32>
    %7 = tpu.matmul %5, %6, %cst {dimension_numbers = #tpu.dot_dimension_numbers<[1], [0], [0], [1], [0, 0, 1, 1], [], []>} : vector<16x8xf32>, vector<8x128xf32>, vector<16x128xf32> -> vector<16x128xf32>
    %c0_3 = arith.constant 0 : index
    %c0_4 = arith.constant 0 : index
    %8 = vector.load %arg2[%c0_3, %c0_4] : memref<16x128xf32, #tpu.memory_space<vmem>>, vector<16x128xf32>
    %9 = arith.addf %8, %7 : vector<16x128xf32>
    %c0_5 = arith.constant 0 : index
    %c0_6 = arith.constant 0 : index
    %10 = vector.load %arg4[%c0_5, %c0_6] : memref<16x128xf32, #tpu.memory_space<vmem>>, vector<16x128xf32>
    tpu.vector_store %arg4[%c0_5, %c0_6], %9 {strides = array<i32>} : memref<16x128xf32, #tpu.memory_space<vmem>>, vector<16x128xf32>,
    return
  }
  func.func @transform_0(%arg0: i32) -> (i32, i32) {
    %c0_i32 = arith.constant 0 : i32
    %c0_i32_0 = arith.constant 0 : i32
    return %arg0, %c0_i32 : i32, i32
  }
  func.func @transform_1(%arg0: i32) -> (i32, i32) {
    %c0_i32 = arith.constant 0 : i32
    %c0_i32_0 = arith.constant 0 : i32
    return %arg0, %c0_i32 : i32, i32
  }
  func.func @transform_2(%arg0: i32) -> (i32, i32) {
    %c0_i32 = arith.constant 0 : i32
    %c0_i32_0 = arith.constant 0 : i32
    %c0_i32_1 = arith.constant 0 : i32
    return %c0_i32, %c0_i32_0 : i32, i32
  }
  func.func @transform_3(%arg0: i32) -> (i32, i32) {
    %c0_i32 = arith.constant 0 : i32
    %c0_i32_0 = arith.constant 0 : i32
    return %arg0, %c0_i32 : i32, i32
  }
}

</mosaic_0001>

<bundles_post_ra>
// kernel: tpu_custom_call.1
= control target key start
LH: loop header
LB: loop body
LE: loop exit
PB: predicated region body
PF: predicated region fallthrough
CT: control target
= control target key end

     0   :  { %s230_s0 = inlined_call_operand.vmem [shape: s32[16,1], index: 0, kind: input, shape index: {}]   ;;  %s231_s1 = inlined_call_operand.vmem [shape: f32[16,128], index: 1, kind: input, shape index: {}]   ;;  %s232_s2 = inlined_call_operand.vmem [shape: f32[8,128], index: 2, kind: input, shape index: {}]   ;;  %s233_s3 = inlined_call_operand.hbm [shape: f32[16,128], index: 3, kind: output, shape index: {}]  }
   0x1   :  { %v15_v0 = vld [vmem:[%s230_s0] sm:$0xff] }
   0x2   :  { %8 = vsyncpa [#allocation3], 0  ;;  %v178_v1 = vmov 0   ;;  %v16_v2 = vld [vmem:[%s230_s0 + $0x8] sm:$0xff]  ;;  %v31_v3 = vld [vmem:[%s232_s2] sm:$0xff]  ;;  %v17_v4 = vlaneseq  ;;  %vm32_vm0 = vcmask 64512  }
   0x3   :  { %153 = vset.pattern.permute.xlu0 %v178_v1  ;;  %143 = vmatprep.subr.mxu0 %v31_v3  ;;  %v179_v7 = vmov 0.0   ;;  %v115_v11 = vld [vmem:[%s231_s1 + $0x8] sm:$0xff]  ;;  %s180_s2 = smov [#allocation2]   ;;  %v114_v12 = vld [vmem:[%s231_s1] sm:$0xff] }
   0x4   :  { %20 = vperm.xlu0 %153, %v15_v0   ;;  %144 = vmatpush3.msra.mxu0 %v31_v3  ;;  %v18_v5 = vand.u32 127, %v17_v4  ;;  %s125_s19 = sshll.u32 %s180_s2, 4  ;;  %s126_s19 = int_to_ptr.vmem [resolvable:$true] %s125_s19 }
   0x5   :  { %s154_s22 = scalar_lea.vmem %s126_s19, 256  ;;  %p159_p1 = scmp.lt.s32.totalorder %s126_s19, %s126_s19 }
   0x6   :  { %p155_p0 = scmp.ne.s32.totalorder %s126_s19, %s154_s22  ;;  %p160_p2 = scmp.lt.s32.totalorder %s154_s22, %s154_s22 }
   0x8   :  { %23 = vperm.xlu0 %153, %v16_v2   ;;  %p161_p3 = por %p160_p2, %p159_p1 }
   0xa   :  { %p162_p4 = pnand %p161_p3, %p155_p0 }
  0x83   :  { %v21_v6 = vpop.permute.xlu0 %20 }
  0x84   :  { %vm25_vm1 = vcmp.eq.s32.totalorder %v21_v6, %v18_v5 }
  0x85   :  { %v136_v8 = vsel %vm25_vm1, 1.0, %v179_v7 }
  0x86   :  { %145 = vmatprep.mubr.msk.f32.mxu0 %vm32_vm0, %v136_v8 }
  0x87   :  { %v24_v9 = vpop.permute.xlu0 %23 }
  0x88   :  { %vm26_vm2 = vcmp.eq.s32.totalorder %v24_v9, %v18_v5 }
  0x89   :  { %v137_v10 = vsel %vm26_vm2, 1.0, %v179_v7 }
  0x8a   :  { %146 = vmatmul.mubr.msk.f32.vlgmr.msra.gmra.mrb[0].mxu0 %vm32_vm0, %v137_v10 }
 0x15d   :  { %v147_v13 = vpop.f32.mrb[0].mxu0 }
 0x15e   :  { %v117_v14 = vadd.f32 %v147_v13, %v115_v11  ;;  %v105_v15 = vpop.f32.mrb[1].mxu0 }
 0x15f   :  { %v116_v16 = vadd.f32 %v114_v12, %v105_v15 }
 0x160   :  { %119 = vst [vmem:[#allocation2 + $0x8] sm:$0xff] %v117_v14 }
 0x161   :  { %118 = vst [vmem:[#allocation2] sm:$0xff] %v116_v16 }
 0x162   :  { %165 = shalt.err (!%p162_p4)
}
 0x163   :  { %s166_s25 = scalar_lea.hbm %s233_s3, 256 }
 0x164   :  { %p167_p5 = scmp.ne.s32.totalorder %s233_s3, %s166_s25  ;;  %p170_p6 = scmp.lt.u32.totalorder %s166_s25, %s233_s3 }
 0x166   :  { %p172_p7 = pnand %p170_p6, %p167_p5 }
 0x168   :  { %175 = shalt.err (!%p172_p7)
}
 0x169   :  { %s181_s29 = smov 128   ;;  %s182_s30 = smov 8  }
 0x16a   :  { %131 = dma.vmem_to_hbm [thread:$0]  %s126_s19, 256, %s233_s3, [#allocation3], %s181_s29, %s181_s29, %s182_s30  }
 0x16b   :  { %176 = dma.done.wait [#allocation3], 256  }
 0x16c   :  { %177 = vsyncadd [#allocation3], 4294967040 }
 0x16d   :  { %135 = vsyncpa [#allocation3], 1 }

</bundles_post_ra>
